<compile_context>
chip_gen: v7x
topology: tpu7x:2x2x1
jax: 0.10.0
libtpu: 0.0.40
codegen_flags: <defaults>
</compile_context>

<pallas_src>
import functools

import jax
import jax.numpy as jnp
from jax.experimental import pallas as pl
from jax.experimental.pallas import tpu as pltpu


def diffusion_loss_kernel(coef_ref,                 # SMEM (B, 5): sigma, c_in, c_skip, c_out, scale
                          x_ref, noise_ref,         # VMEM (C, Tc) each (batch dim squeezed)
                          bias1_ref,                # VMEM (H, 1): b1 + bemb + wemb * c_noise   (per batch)
                          w1_ref, w2_ref, b2_ref,   # VMEM (H, C), (C, H), (C, 1)
                          out_ref,                  # VMEM (1, 1, Tc) lane-dense weighted partials
                          *, t_total, tc, mask_tail):
    b = pl.program_id(0)

    # Per-batch EDM coefficients, precomputed in the wrapper (SMEM scalars).
    sigma = coef_ref[b, 0]
    c_in = coef_ref[b, 1]
    c_skip = coef_ref[b, 2]
    c_out = coef_ref[b, 3]
    scale = coef_ref[b, 4]      # loss_weight(sigma) / (C * T * B)

    x = x_ref[...]              # (C, Tc)
    noise = noise_ref[...]      # (C, Tc)

    # Noising + input preconditioning.
    x_noisy = x + sigma * noise
    x_in = c_in * x_noisy

    # Synthetic net: sigma-conditioned 1x1-conv MLP over channels; the whole
    # T-chunk sits in the MXU N dimension.  The sigma embedding is already
    # folded into the (H, 1) bias column.
    h = jnp.dot(w1_ref[...], x_in, preferred_element_type=jnp.float32)     # (H, Tc)
    h = jnp.maximum(h + bias1_ref[...], 0.0)
    x_pred = jnp.dot(w2_ref[...], h, preferred_element_type=jnp.float32)   # (C, Tc)
    x_pred = jnp.tanh(x_pred + b2_ref[...])

    # Denoise + weighted squared error, reduced over channels only; per-lane
    # partials go straight out as a full-width (lane-dense) store.
    x_denoised = c_skip * x_noisy + c_out * x_pred
    diff = x_denoised - x
    part = jnp.sum(diff * diff, axis=0, keepdims=True) * scale             # (1, Tc)

    if mask_tail:
        # Zero contributions from lanes past T in the last (partial) chunk.
        t = pl.program_id(1)
        lane = jax.lax.broadcasted_iota(jnp.int32, (1, tc), 1)
        part = jnp.where(t * tc + lane < t_total, part, 0.0)

    out_ref[0] = part


def _pick_tile_lanes(T, C, H, vmem_budget_bytes, need_two_chunks):
    """Largest 128-multiple T-chunk that fits the VMEM budget (f32 math)."""
    # Approx resident bytes per lane of one T-chunk:
    #   x, noise inputs double-buffered: 2 * 2 * C
    #   f32 temporaries (x_noisy, x_in, x_pred, x_denoised, diff): ~5 * C
    #   hidden activations h: H
    #   output partials (double-buffered): 2
    bytes_per_lane = 4 * (4 * C + 5 * C + H + 2)
    max_tc = max(128, (vmem_budget_bytes // bytes_per_lane) // 128 * 128)

    tc = min(max(128, (T // 128) * 128), max_tc)
    if need_two_chunks and T >= 256:
        # Guarantee >= 2 T-chunks so the "parallel" grid can use both
        # TensorCores on v7x even when B == 1.
        half = -(-(-(-T // 2)) // 128) * 128
        tc = min(tc, max(128, half))
    return tc


def diffusion_forward(x, noise, sigmas, params, *, sigma_data,
                      vmem_budget_bytes=12 * 1024 * 1024):
    """Returns the scalar EDM training loss (mean over batch)."""
    B, C, T = x.shape
    w1, b1, wemb, bemb, w2, b2 = params
    H = w1.shape[0]
    assert T >= 128, "T must be at least 128 lanes"

    sd2 = float(sigma_data) * float(sigma_data)

    # ---- Per-batch EDM coefficients (B scalars each) -> SMEM scalar prefetch.
    sig = sigmas.astype(jnp.float32)
    denom = sig * sig + sd2
    c_in = jax.lax.rsqrt(denom)
    c_skip = sd2 / denom
    c_out = sig * sigma_data * c_in
    c_noise = 0.25 * jnp.log(sig)
    # loss_weight(sigma) / (C*T) [per-batch mean] / B [batch mean], fused.
    scale = denom / ((sig * sigma_data) ** 2) / float(C * T * B)
    coef = jnp.stack([sig, c_in, c_skip, c_out, scale], axis=1)       # (B, 5)

    # Per-batch first-layer bias with the sigma embedding folded in: (B, H, 1).
    bias1 = (b1 + bemb)[None, :, :] + wemb[None, :, :] * c_noise[:, None, None]

    # ---- Tile the time axis (native layout; batch is a squeezed grid axis).
    tc = _pick_tile_lanes(T, C, H, vmem_budget_bytes, need_two_chunks=(B < 2))
    n_t = pl.cdiv(T, tc)
    mask_tail = (T % tc) != 0

    kernel = functools.partial(
        diffusion_loss_kernel, t_total=T, tc=tc, mask_tail=mask_tail)

    partial = pl.pallas_call(
        kernel,
        out_shape=jax.ShapeDtypeStruct((B, 1, T), jnp.float32),
        grid_spec=pltpu.PrefetchScalarGridSpec(
            num_scalar_prefetch=1,                       # coef -> SMEM
            grid=(B, n_t),
            in_specs=[
                pl.BlockSpec((None, C, tc), lambda b, t, coef: (b, 0, t)),  # x
                pl.BlockSpec((None, C, tc), lambda b, t, coef: (b, 0, t)),  # noise
                pl.BlockSpec((None, H, 1), lambda b, t, coef: (b, 0, 0)),   # per-batch bias1
                pl.BlockSpec((H, C), lambda b, t, coef: (0, 0)),            # w1
                pl.BlockSpec((C, H), lambda b, t, coef: (0, 0)),            # w2
                pl.BlockSpec((C, 1), lambda b, t, coef: (0, 0)),            # b2
            ],
            out_specs=pl.BlockSpec((1, 1, tc), lambda b, t, coef: (b, 0, t)),
        ),
        compiler_params=pltpu.CompilerParams(
            dimension_semantics=("parallel", "parallel"),  # disjoint output blocks
            vmem_limit_bytes=32 * 1024 * 1024),
    )(coef, x, noise, bias1, w1, w2, b2)

    # Tiny final reduction of the lane-dense weighted partials.
    # TODO(synk): feed x/noise as bf16 from upstream producers to halve HBM
    # traffic further; casting here would add an extra XLA pass, so skipped.
    return jnp.sum(partial)


def reference_loss(x, noise, sigmas, params, *, sigma_data):
    """Pure-JAX mirror of the PyTorch Diffusion.forward semantics."""
    w1, b1, wemb, bemb, w2, b2 = params
    sd2 = sigma_data * sigma_data
    sp = sigmas[:, None, None]                                    # b -> b 1 1
    x_noisy = x + sp * noise
    denom = sp * sp + sd2
    c_in = jax.lax.rsqrt(denom)
    c_skip = sd2 / denom
    c_out = sp * sigma_data * jax.lax.rsqrt(denom)
    c_noise = jnp.log(sigmas) * 0.25                              # (B,)

    x_in = c_in * x_noisy
    emb = wemb[None] * c_noise[:, None, None] + bemb[None]        # (B, H, 1)
    h = jnp.einsum('hc,bct->bht', w1, x_in) + b1[None] + emb
    h = jnp.maximum(h, 0.0)
    x_pred = jnp.tanh(jnp.einsum('ch,bht->bct', w2, h) + b2[None])

    x_denoised = c_skip * x_noisy + c_out * x_pred
    losses = jnp.mean((x_denoised - x) ** 2, axis=(1, 2))         # 'b ... -> b'
    lw = (sigmas ** 2 + sd2) * (sigmas * sigma_data) ** (-2.0)
    return jnp.mean(losses * lw)


if __name__ == "__main__":
    B, C, T, H = 2, 8, 256, 32
    SIGMA_DATA = 0.5

    key = jax.random.PRNGKey(0)
    kx, kn, ks, k1, k2, k3, k4 = jax.random.split(key, 7)

    x = jax.random.normal(kx, (B, C, T), dtype=jnp.float32)
    noise = jax.random.normal(kn, (B, C, T), dtype=jnp.float32)

    # SigmaSampler: deterministic EDM-style log-normal sampler.
    # TODO(synk): the spec's SigmaSampler is abstract; a log-normal sampler is used.
    sigmas = jnp.exp(-1.2 + 1.2 * jax.random.normal(ks, (B,), dtype=jnp.float32))

    # Deterministic synthetic net parameters (spec's `net` is an abstract nn.Module).
    w1 = 0.2 * jax.random.normal(k1, (H, C), dtype=jnp.float32)
    b1 = jnp.zeros((H, 1), dtype=jnp.float32)
    wemb = 0.2 * jax.random.normal(k2, (H, 1), dtype=jnp.float32)
    bemb = 0.1 * jax.random.normal(k3, (H, 1), dtype=jnp.float32)
    w2 = 0.2 * jax.random.normal(k4, (C, H), dtype=jnp.float32)
    b2 = jnp.zeros((C, 1), dtype=jnp.float32)
    params = (w1, b1, wemb, bemb, w2, b2)

    loss = diffusion_forward(x, noise, sigmas, params, sigma_data=SIGMA_DATA)
    loss = jax.block_until_ready(loss)

    ref = reference_loss(x, noise, sigmas, params, sigma_data=SIGMA_DATA)
    assert jnp.allclose(loss, ref, rtol=1e-3, atol=1e-5), (loss, ref)

    print("KERNEL_OK")
</pallas_src>

<mosaic_0001>
module attributes {stable_mosaic.version = 11 : i64} {
  func.func @diffusion_loss_kernel(%arg0: i32, %arg1: i32, %arg2: memref<2x5xf32, #tpu.memory_space<smem>>, %arg3: memref<1x8x256xf32, #tpu.memory_space<vmem>>, %arg4: memref<1x8x256xf32, #tpu.memory_space<vmem>>, %arg5: memref<1x32x1xf32, #tpu.memory_space<vmem>>, %arg6: memref<32x8xf32, #tpu.memory_space<vmem>>, %arg7: memref<8x32xf32, #tpu.memory_space<vmem>>, %arg8: memref<8x1xf32, #tpu.memory_space<vmem>>, %arg9: memref<1x1x256xf32, #tpu.memory_space<vmem>>) attributes {dimension_semantics = [#tpu.dimension_semantics<parallel>, #tpu.dimension_semantics<parallel>], iteration_bounds = array<i64: 2, 1>, scalar_prefetch = 1 : i64, scratch_operands = 0 : i64, tpu.core_type = #tpu.core_type<tc>, window_params = [{transform_indices = @transform_0, window_bounds = array<i64: 1, 8, 256>}, {transform_indices = @transform_1, window_bounds = array<i64: 1, 8, 256>}, {transform_indices = @transform_2, window_bounds = array<i64: 1, 32, 1>}, {pipeline_mode = #tpu.pipeline_mode<synchronous>, transform_indices = @transform_3, window_bounds = array<i64: 32, 8>}, {pipeline_mode = #tpu.pipeline_mode<synchronous>, transform_indices = @transform_4, window_bounds = array<i64: 8, 32>}, {pipeline_mode = #tpu.pipeline_mode<synchronous>, transform_indices = @transform_5, window_bounds = array<i64: 8, 1>}, {transform_indices = @transform_6, window_bounds = array<i64: 1, 1, 256>}]} {
    %0 = arith.index_cast %arg0 : i32 to index
    %c0 = arith.constant 0 : index
    %1 = memref.load %arg2[%0, %c0] : memref<2x5xf32, #tpu.memory_space<smem>>
    %2 = arith.index_cast %arg0 : i32 to index
    %c1 = arith.constant 1 : index
    %3 = memref.load %arg2[%2, %c1] : memref<2x5xf32, #tpu.memory_space<smem>>
    %4 = arith.index_cast %arg0 : i32 to index
    %c2 = arith.constant 2 : index
    %5 = memref.load %arg2[%4, %c2] : memref<2x5xf32, #tpu.memory_space<smem>>
    %6 = arith.index_cast %arg0 : i32 to index
    %c3 = arith.constant 3 : index
    %7 = memref.load %arg2[%6, %c3] : memref<2x5xf32, #tpu.memory_space<smem>>
    %8 = arith.index_cast %arg0 : i32 to index
    %c4 = arith.constant 4 : index
    %9 = memref.load %arg2[%8, %c4] : memref<2x5xf32, #tpu.memory_space<smem>>
    %c0_0 = arith.constant 0 : index
    %c0_1 = arith.constant 0 : index
    %c0_2 = arith.constant 0 : index
    %10 = vector.load %arg3[%c0_0, %c0_1, %c0_2] : memref<1x8x256xf32, #tpu.memory_space<vmem>>, vector<1x8x256xf32>
    %11 = vector.shape_cast %10 : vector<1x8x256xf32> to vector<8x256xf32>
    %c0_3 = arith.constant 0 : index
    %c0_4 = arith.constant 0 : index
    %c0_5 = arith.constant 0 : index
    %12 = vector.load %arg4[%c0_3, %c0_4, %c0_5] : memref<1x8x256xf32, #tpu.memory_space<vmem>>, vector<1x8x256xf32>
    %13 = vector.shape_cast %12 : vector<1x8x256xf32> to vector<8x256xf32>
    %14 = vector.broadcast %1 : f32 to vector<8x256xf32>
    %15 = arith.mulf %14, %13 : vector<8x256xf32>
    %16 = arith.addf %11, %15 : vector<8x256xf32>
    %17 = vector.broadcast %3 : f32 to vector<8x256xf32>
    %18 = arith.mulf %17, %16 : vector<8x256xf32>
    %c0_6 = arith.constant 0 : index
    %c0_7 = arith.constant 0 : index
    %19 = vector.load %arg6[%c0_6, %c0_7] : memref<32x8xf32, #tpu.memory_space<vmem>>, vector<32x8xf32>
    %cst = arith.constant dense<0.000000e+00> : vector<32x256xf32>
    %20 = tpu.matmul %19, %18, %cst {dimension_numbers = #tpu.dot_dimension_numbers<[1], [0], [0], [1], [0, 0, 1, 1], [], []>} : vector<32x8xf32>, vector<8x256xf32>, vector<32x256xf32> -> vector<32x256xf32>
    %c0_8 = arith.constant 0 : index
    %c0_9 = arith.constant 0 : index
    %c0_10 = arith.constant 0 : index
    %21 = vector.load %arg5[%c0_8, %c0_9, %c0_10] : memref<1x32x1xf32, #tpu.memory_space<vmem>>, vector<1x32x1xf32>
    %22 = vector.shape_cast %21 : vector<1x32x1xf32> to vector<32x1xf32>
    %23 = vector.broadcast %22 : vector<32x1xf32> to vector<32x256xf32>
    %24 = arith.addf %20, %23 : vector<32x256xf32>
    %cst_11 = arith.constant 0.000000e+00 : f32
    %25 = vector.broadcast %cst_11 : f32 to vector<32x256xf32>
    %26 = arith.maximumf %24, %25 : vector<32x256xf32>
    %c0_12 = arith.constant 0 : index
    %c0_13 = arith.constant 0 : index
    %27 = vector.load %arg7[%c0_12, %c0_13] : memref<8x32xf32, #tpu.memory_space<vmem>>, vector<8x32xf32>
    %cst_14 = arith.constant dense<0.000000e+00> : vector<8x256xf32>
    %28 = tpu.matmul %27, %26, %cst_14 {dimension_numbers = #tpu.dot_dimension_numbers<[1], [0], [0], [1], [0, 0, 1, 1], [], []>} : vector<8x32xf32>, vector<32x256xf32>, vector<8x256xf32> -> vector<8x256xf32>
    %c0_15 = arith.constant 0 : index
    %c0_16 = arith.constant 0 : index
    %29 = vector.load %arg8[%c0_15, %c0_16] : memref<8x1xf32, #tpu.memory_space<vmem>>, vector<8x1xf32>
    %30 = vector.broadcast %29 : vector<8x1xf32> to vector<8x256xf32>
    %31 = arith.addf %28, %30 : vector<8x256xf32>
    %32 = math.tanh %31 : vector<8x256xf32>
    %33 = vector.broadcast %5 : f32 to vector<8x256xf32>
    %34 = arith.mulf %33, %16 : vector<8x256xf32>
    %35 = vector.broadcast %7 : f32 to vector<8x256xf32>
    %36 = arith.mulf %35, %32 : vector<8x256xf32>
    %37 = arith.addf %34, %36 : vector<8x256xf32>
    %38 = arith.subf %37, %11 : vector<8x256xf32>
    %39 = arith.mulf %38, %38 : vector<8x256xf32>
    %cst_17 = arith.constant dense<0.000000e+00> : vector<256xf32>
    %40 = vector.multi_reduction <add>, %39, %cst_17 [0] : vector<8x256xf32> to vector<256xf32>
    %41 = vector.shape_cast %40 : vector<256xf32> to vector<1x256xf32>
    %42 = vector.broadcast %9 : f32 to vector<1x256xf32>
    %43 = arith.mulf %41, %42 : vector<1x256xf32>
    %c0_18 = arith.constant 0 : index
    %c0_19 = arith.constant 0 : index
    %c0_20 = arith.constant 0 : index
    %44 = vector.load %arg9[%c0_18, %c0_19, %c0_20] : memref<1x1x256xf32, #tpu.memory_space<vmem>>, vector<1x1x256xf32>
    %45 = vector.shape_cast %44 : vector<1x1x256xf32> to vector<1x256xf32>
    %46 = vector.shape_cast %43 : vector<1x256xf32> to vector<1x1x256xf32>
    tpu.vector_store %arg9[%c0_18, %c0_19, %c0_20], %46 {strides = array<i32>} : memref<1x1x256xf32, #tpu.memory_space<vmem>>, vector<1x1x256xf32>,
    return
  }
  func.func @transform_0(%arg0: i32, %arg1: i32, %arg2: memref<2x5xf32, #tpu.memory_space<smem>>) -> (i32, i32, i32) {
    %c0_i32 = arith.constant 0 : i32
    %c0_i32_0 = arith.constant 0 : i32
    return %arg0, %c0_i32, %arg1 : i32, i32, i32
  }
  func.func @transform_1(%arg0: i32, %arg1: i32, %arg2: memref<2x5xf32, #tpu.memory_space<smem>>) -> (i32, i32, i32) {
    %c0_i32 = arith.constant 0 : i32
    %c0_i32_0 = arith.constant 0 : i32
    return %arg0, %c0_i32, %arg1 : i32, i32, i32
  }
  func.func @transform_2(%arg0: i32, %arg1: i32, %arg2: memref<2x5xf32, #tpu.memory_space<smem>>) -> (i32, i32, i32) {
    %c0_i32 = arith.constant 0 : i32
    %c0_i32_0 = arith.constant 0 : i32
    %c0_i32_1 = arith.constant 0 : i32
    return %arg0, %c0_i32, %c0_i32_0 : i32, i32, i32
  }
  func.func @transform_3(%arg0: i32, %arg1: i32, %arg2: memref<2x5xf32, #tpu.memory_space<smem>>) -> (i32, i32) {
    %c0_i32 = arith.constant 0 : i32
    %c0_i32_0 = arith.constant 0 : i32
    %c0_i32_1 = arith.constant 0 : i32
    return %c0_i32, %c0_i32_0 : i32, i32
  }
  func.func @transform_4(%arg0: i32, %arg1: i32, %arg2: memref<2x5xf32, #tpu.memory_space<smem>>) -> (i32, i32) {
    %c0_i32 = arith.constant 0 : i32
    %c0_i32_0 = arith.constant 0 : i32
    %c0_i32_1 = arith.constant 0 : i32
    return %c0_i32, %c0_i32_0 : i32, i32
  }
  func.func @transform_5(%arg0: i32, %arg1: i32, %arg2: memref<2x5xf32, #tpu.memory_space<smem>>) -> (i32, i32) {
    %c0_i32 = arith.constant 0 : i32
    %c0_i32_0 = arith.constant 0 : i32
    %c0_i32_1 = arith.constant 0 : i32
    return %c0_i32, %c0_i32_0 : i32, i32
  }
  func.func @transform_6(%arg0: i32, %arg1: i32, %arg2: memref<2x5xf32, #tpu.memory_space<smem>>) -> (i32, i32, i32) {
    %c0_i32 = arith.constant 0 : i32
    %c0_i32_0 = arith.constant 0 : i32
    return %arg0, %c0_i32, %arg1 : i32, i32, i32
  }
}

</mosaic_0001>

<bundles_post_ra>
// kernel: tpu_custom_call.1
= control target key start
LH: loop header
LB: loop body
LE: loop exit
PB: predicated region body
PF: predicated region fallthrough
CT: control target
= control target key end

     0   :  { %s1167_s0 = inlined_call_operand.vmem [shape: f32[2,5], index: 0, kind: input, shape index: {}]   ;;  %s1168_s1 = inlined_call_operand.vmem [shape: f32[2,8,256], index: 1, kind: input, shape index: {}]   ;;  %s1169_s2 = inlined_call_operand.vmem [shape: f32[2,8,256], index: 2, kind: input, shape index: {}]   ;;  %s1170_s3 = inlined_call_operand.vmem [shape: f32[2,32,1], index: 3, kind: input, shape index: {}]   ;;  %s1171_s4 = inlined_call_operand.vmem [shape: f32[32,8], index: 4, kind: input, shape index: {}]   ;;  %s1172_s5 = inlined_call_operand.vmem [shape: f32[8,32], index: 5, kind: input, shape index: {}]   ;;  %s1173_s6 = inlined_call_operand.vmem [shape: f32[8,1], index: 6, kind: input, shape index: {}]   ;;  %s1174_s7 = inlined_call_operand.hbm [shape: f32[2,1,256], index: 7, kind: output, shape index: {}]  }
   0x1   :  { %s12_s26 = sshll.u32 %s1167_s0, 4  ;;  %s13_s26 = int_to_ptr.vmem [resolvable:$true] %s12_s26 }
   0x2   :  { %s861_s27 = scalar_lea.vmem %s13_s26, 32  ;;  %p866_p1 = scmp.lt.s32.totalorder %s13_s26, %s13_s26 }
   0x3   :  { %p862_p0 = scmp.ne.s32.totalorder %s13_s26, %s861_s27  ;;  %p867_p2 = scmp.lt.s32.totalorder %s861_s27, %s861_s27 }
   0x5   :  { %p868_p3 = por %p867_p2, %p866_p1 }
   0x7   :  { %p869_p4 = pnand %p868_p3, %p862_p0 }
   0x9   :  { %872 = shalt.err (!%p869_p4)  }
   0xa   :  { %s955_s28 = smov [#allocation3]  }
   0xb   :  { %15 = dma.vmem_to_smem %s13_s26, 32, %s955_s28, [#allocation2] }
   0xc   :  { %925 = dma.done.wait [#allocation2], 32 }
   0xd   :  { %926 = vsyncadd [#allocation2], 4294967264 }
   0xe   :  { %17 = sfence }
   0xf   :  { %18 = vsyncpa [#allocation5], 0 }
  0x10   :  { %20 = vsyncpa [#allocation5 + $0x1], 0  ;;  %s1003_s29 = smov 0   ;;  %s1005_s30 = smov 0  }
  0x11   :  { %s1007_s0 = smov 0   ;;  %s1009_s8 = smov 0  }
  0x12   :  { %s1011_s9 = smov 0   ;;  %s1013_s10 = smov 0  }
  0x13 LB: > { %s761_s11 = sadd.s32 4294967295, %s953_s10   ;;  %s762_s12 = sadd.s32 4294967294, %s953_s10   ;;  %s953_s10 = sphi %s1013_s10, %s26_s10   ;;  %s949_s9 = sphi %s1011_s9, %s1184_s9   ;;  %s945_s8 = sphi %s1009_s8, %s1183_s8   ;;  %s941_s0 = sphi %s1007_s0, %s1182_s0   ;;  %s937_s30 = sphi %s1005_s30, %s1181_s30   ;;  %s933_s29 = sphi %s1003_s29, %s1180_s29  }
  0x14   : > { %s38_s13 = sadd.s32 1, %s949_s9  ;;  %s192_s14 = sadd.s32 1, %s941_s0 }
  0x15   : > { %p40_p5 = scmp.ge.s32.totalorder %s38_s13, 2  ;;  %p202_p6 = scmp.ne.s32.totalorder %s941_s0, %s937_s30 }
  0x16   : > { %p203_p7 = scmp.eq.s32.totalorder %s761_s11, 1  ;;  %p208_p8 = scmp.ne.s32.totalorder %s937_s30, %s933_s29 }
  0x17   : > { %s1186_s13 = smov (%p40_p5, %s38_s13), 0  ;;  %p209_p10 = scmp.eq.s32.totalorder %s762_s12, 1 }
  0x18   : > { %1176 = sst [smem:[#allocation8_spill]] %s1186_s13  ;;  %p1043_p9 = por %p203_p7, %p202_p6 }
  0x19   : > { %s187_s16 = ssub.s32 %s949_s9, %s1186_s13  ;;  %p765_p11 = scmp.ge.s32.totalorder %s953_s10, 1 }
  0x1a   : > { %p190_p12 = scmp.eq.s32.totalorder %s187_s16, 0  ;;  %p1050_p13 = por %p209_p10, %p208_p8 }
  0x1b   : > { %p270_p0 = scmp.lt.s32.totalorder %s953_s10, 3 }
  0x1c   : > { %s1056_s18 = scalar_select %p190_p12, %s941_s0, %s192_s14  }
  0x1d   : > { %p271_p1 = pnand %p765_p11, %p270_p0 }
  0x1e   : > { %p319_p2 = scmp.lt.s32.totalorder (!%p271_p1), %s945_s8, 1  ;;  %s1060_s19 = sshll.u32 (!%p271_p1), %s945_s8, 7  ;;  %v956_v0 = vmov (!%p271_p1), 0.0   ;;  %v957_v1 = vmov (!%p271_p1), 0   ;;  %v366_v18 = vld [vmem:[%s1171_s4] sm:$0xff] (!%p271_p1)  ;;  %vm394_vm0 = vcmask (!%p271_p1), 64512  }
  0x1f   : > { %274 = sbr.rel (%p271_p1) target bundleno = 554 (0x22a), region = 44  ;;  %s345_s20 = sld [smem:[#allocation3 + %s1060_s19]] (!%p271_p1)  ;;  %471 = vmatprep.mubr.f32.mxu0 (!%p271_p1), %v956_v0  ;;  %579 = vmatprep.mubr.f32.mxu1 (!%p271_p1), %v956_v0  ;;  %v505_v19 = vld [vmem:[%s1173_s6] sm:$0xff] (!%p271_p1)  ;;  %v367_v20 = vld [vmem:[%s1171_s4 + $0x8] sm:$0xff] (!%p271_p1)  ;;  %v368_v21 = vld [vmem:[%s1171_s4 + $0x10] sm:$0xff] (!%p271_p1)  ;;  %vm511_vm1 = vcmask (!%p271_p1), 261120  }
  0x20   : > { %s346_s21 = sadd.s32 (!%p271_p1), 1, %s1060_s19  ;;  %855 = vset.pattern.permute.xlu0 (!%p271_p1), %v957_v1  ;;  %856 = vset.pattern.permute.xlu1 (!%p271_p1), %v957_v1  ;;  %v369_v22 = vld [vmem:[%s1171_s4 + $0x18] sm:$0xff] (!%p271_p1)  ;;  %v504_v55 = vld [vmem:[%s1172_s5] sm:$0xff] (!%p271_p1)  ;;  %s348_s16 = sadd.s32 (!%p271_p1), 2, %s1060_s19 }
  0x21   : > { %s347_s23 = sld [smem:[#allocation3 + %s346_s21]] (!%p271_p1)  ;;  %s787_s25 = sshll.u32 (!%p271_p1), %s945_s8, 5 }
  0x22   : > { %s349_s13 = sld [smem:[#allocation3 + %s348_s16]] (!%p271_p1) }
  0x25   : > { %v358_v4 = vstv (!%p271_p1), %s345_s20 }
  0x26   : > { %s320_s22 = scalar_select %p319_p2, %s945_s8, 1 }
  0x27   : > { %v363_v11 = vstv %s347_s23  ;;  %s959_s8 = smov [#allocation4]  }
  0x28   : > { %s784_s24 = sshll.u32 %s320_s22, 4  ;;  %s786_s14 = sshll.u32 %s320_s22, 5  ;;  %v588_v61 = vstv %s349_s13 }
  0x29   : > { %s326_s27 = scalar_lea.vmem %s1168_s1, %s784_s24  ;;  %s336_s12 = scalar_lea.vmem %s1169_s2, %s784_s24 }
  0x2a   : > { %v357_v2 = vld [vmem:[%s336_s12 + $0x8] sm:$0xff]  ;;  %v1073_v5 = vld [vmem:[%s326_s27] sm:$0xff]  ;;  %s342_s21 = scalar_lea.vmem %s1170_s3, %s786_s14  ;;  %s352_s22 = sadd.s32 4, %s1060_s19 }
  0x2b   : > { %v1071_v3 = vld [vmem:[%s326_s27 + $0x8] sm:$0xff]  ;;  %v356_v6 = vld [vmem:[%s336_s12] sm:$0xff]  ;;  %v360_v7 = vmul.f32 %v358_v4, %v357_v2  ;;  %v372_v10 = vld [vmem:[%s342_s21 + $0x10] sm:$0xff]  ;;  %s353_s23 = sld [smem:[#allocation3 + %s352_s22]]  ;;  %s315_s24 = sand.u32 1, %s937_s30  }
  0x2c   : > { %v359_v8 = vmul.f32 %v358_v4, %v356_v6  ;;  %v370_v9 = vld [vmem:[%s342_s21] sm:$0xff]  ;;  %386 = vperm.xlu1 %856, %v372_v10   ;;  %v371_v14 = vld [vmem:[%s342_s21 + $0x8] sm:$0xff]  ;;  %v373_v15 = vld [vmem:[%s342_s21 + $0x18] sm:$0xff]  ;;  %s350_s21 = sadd.s32 3, %s1060_s19  ;;  %s766_s19 = sshll.u32 %s315_s24, 1 }
  0x2d   : > { %376 = vperm.xlu0 %855, %v370_v9   ;;  %v1079_v12 = vadd.f32 %v360_v7, %v1071_v3  ;;  %s351_s20 = sld [smem:[#allocation3 + %s350_s21]]  ;;  %s317_s26 = scalar_lea.vmem [#allocation4], %s766_s19 }
  0x2e   : > { %v1082_v13 = vadd.f32 %v359_v8, %v1073_v5  ;;  %s655_s27 = sshll.u32 %s317_s26, 4  ;;  %s1120_s12 = scalar_lea.hbm %s1174_s7, %s787_s25  ;;  %s1122_s27 = int_to_ptr.vmem [resolvable:$true] %s655_s27 }
  0x2f   : > { %v365_v16 = vmul.f32 %v363_v11, %v1079_v12  ;;  %v590_v1 = vmul.f32 %v588_v61, %v1079_v12  ;;  %s639_s14 = scalar_lea.sflag [#allocation5], %s315_s24  ;;  %s873_s16 = scalar_lea.vmem %s1122_s27, 32 }
  0x30   : > { %v364_v17 = vmul.f32 %v363_v11, %v1082_v13  ;;  %391 = vperm.xlu1 %856, %v373_v15   ;;  %v589_v63 = vmul.f32 %v588_v61, %v1082_v13  ;;  %p874_p3 = scmp.ne.s32.totalorder %s1122_s27, %s873_s16  ;;  %s877_s21 = sshll.u32 %s959_s8, 4  ;;  %s878_s21 = int_to_ptr.vmem [resolvable:$false] %s877_s21 }
  0x31   : > { %381 = vperm.xlu0 %855, %v371_v14   ;;  %407 = vmatprep.subr.mxu0 %v365_v16  ;;  %s879_s13 = scalar_lea.vmem %s878_s21, 64  ;;  %p880_p6 = scmp.lt.s32.totalorder %s1122_s27, %s878_s21 }
  0x32   : > { %408 = vmatpush1.msra.mxu0 %v364_v17  ;;  %p875_p4 = pnand %p874_p3, %p1043_p9  ;;  %p881_p7 = scmp.lt.s32.totalorder %s879_s13, %s873_s16 }
  0x33   : > { %774 = vmatmul.mubr.msk.f32.vlgmr.msra.gmra.mrb[0].mxu0 %vm394_vm0, %v366_v18  ;;  %v591_v62 = vstv %s351_s20 }
  0x34   : > { %477 = vmatprep.mubr.f32.mxu0 %v956_v0  ;;  %p876_p5 = pneg %p875_p4  ;;  %p882_p8 = por %p881_p7, %p880_p6 }
  0x35   : > { %508 = vperm.xlu0 %855, %v505_v19   ;;  %v958_v19 = vmov 1966171168  }
  0x36   : > { %p883_p10 = pnand %p882_p8, %p876_p5 }
  0x37   : > { %775 = vmatmul.mubr.msk.f32.gmra.mrb[2].mxu0 %vm394_vm0, %v367_v20  ;;  %v619_v20 = vunpack.c.l.s4 %v958_v19 }
  0x38   : > { %483 = vmatprep.mubr.f32.mxu0 %v956_v0 }
  0x3b   : > { %776 = vmatmul.mubr.msk.f32.gmra.mrb[4].mxu0 %vm394_vm0, %v368_v21  ;;  %v621_v21 = vlaneseq }
  0x3c   : > { %489 = vmatprep.mubr.f32.mxu0 %v956_v0 }
  0x3d   : > { %vm635_vm2 = vcmp.lt.s32.totalorder %v621_v21, 256 }
  0x3f   : > { %777 = vmatmul.mubr.msk.f32.gmra.mrb[6].mxu0 %vm394_vm0, %v369_v22 }
  0xab   : > { %v387_v32 = vpop.permute.xlu1 %386 }
  0xac   : > { %v377_v23 = vpop.permute.xlu0 %376 }
  0xaf   : > { %v392_v43 = vpop.permute.xlu1 %391 }
  0xb0   : > { %v382_v27 = vpop.permute.xlu0 %381 }
  0xb4   : > { %v509_v56 = vpop.permute.xlu0 %508 }
 0x106   : > { %v473_v24 = vpop.f32.mrb[0].mxu0 }
 0x107   : > { %v475_v25 = vpop.f32.mrb[1].mxu0  ;;  %v474_v26 = vadd.f32 %v473_v24, %v377_v23 }
 0x108   : > { %v476_v28 = vadd.f32 %v475_v25, %v377_v23  ;;  %v620_v25 = vunpack.c.0.s8 %v619_v20 }
 0x109   : > { %v496_v34 = vmax.f32 %v474_v26, 0.0  ;;  %v622_v26 = vshrl.u32 %v621_v21, 7 }
 0x10a   : > { %v479_v29 = vpop.f32.mrb[2].mxu0  ;;  %v497_v36 = vmax.f32 %v476_v28, 0.0 }
 0x10b   : > { %v480_v30 = vadd.f32 %v479_v29, %v382_v27  ;;  %v481_v31 = vpop.f32.mrb[3].mxu0 }
 0x10c   : > { %v482_v33 = vadd.f32 %v481_v31, %v382_v27  ;;  %v623_v31 = vsub.s32 %v620_v25, %v622_v26 }
 0x10d   : > { %v498_v35 = vmax.f32 %v480_v30, 0.0 }
 0x10e   : > { %v499_v37 = vmax.f32 %v482_v33, 0.0  ;;  %v485_v38 = vpop.f32.mrb[4].mxu0 }
 0x10f   : > { %v487_v39 = vpop.f32.mrb[5].mxu0  ;;  %v790_v40 = vpack.c.bf16 %v498_v35, %v496_v34  ;;  %v486_v42 = vadd.f32 %v485_v38, %v387_v32 }
 0x110   : > { %v788_v41 = vpack.c.bf16 %v499_v37, %v497_v36  ;;  %v488_v44 = vadd.f32 %v487_v39, %v387_v32 }
 0x111   : > { %v500_v49 = vmax.f32 %v486_v42, 0.0 }
 0x112   : > { %v491_v45 = vpop.f32.mrb[6].mxu0  ;;  %789 = vmatprep.subr.bf16.mxu1 %v788_v41  ;;  %v501_v51 = vmax.f32 %v488_v44, 0.0 }
 0x113   : > { %v492_v46 = vadd.f32 %v491_v45, %v392_v43  ;;  %v493_v47 = vpop.f32.mrb[7].mxu0  ;;  %791 = vmatpush1.bf16.msra.mxu1 %v790_v40 }
 0x114   : > { %v494_v48 = vadd.f32 %v493_v47, %v392_v43 }
 0x115   : > { %v502_v50 = vmax.f32 %v492_v46, 0.0 }
 0x116   : > { %v503_v52 = vmax.f32 %v494_v48, 0.0 }
 0x117   : > { %v794_v53 = vpack.c.bf16 %v502_v50, %v500_v49 }
 0x118   : > { %v792_v54 = vpack.c.bf16 %v503_v52, %v501_v51 }
 0x11a   : > { %793 = vmatprep.subr.bf16.mxu1 %v792_v54 }
 0x11b   : > { %795 = vmatpush1.bf16.msra.mxu1 %v794_v53 }
 0x11e   : > { %778 = vmatmul.mubr.msk.f32.vlgmr.msra.gmra.mrb[0].mxu1 %vm511_vm1, %v504_v55 }
 0x1f1   : > { %v581_v57 = vpop.f32.mrb[0].mxu1 }
 0x1f2   : > { %v582_v58 = vadd.f32 %v581_v57, %v509_v56  ;;  %v583_v59 = vpop.f32.mrb[1].mxu1 }
 0x1f3   : > { %v584_v60 = vadd.f32 %v583_v59, %v509_v56 }
 0x1f4   : > { %857 = vtanh.f32 %v582_v58 }
 0x1f5   : > { %859 = vtanh.f32 %v584_v60 }
 0x1fe   : > { %v858_v0 = vpop.eup %857 }
 0x1ff   : > { %v860_v2 = vpop.eup %859  ;;  %v592_v4 = vmul.f32 %v858_v0, %v591_v62 }
 0x200   : > { %v593_v6 = vmul.f32 %v860_v2, %v591_v62 }
 0x201   : > { %v594_v7 = vadd.f32 %v592_v4, %v589_v63 }
 0x202   : > { %v595_v8 = vadd.f32 %v593_v6, %v590_v1 }
 0x203   : > { %v596_v9 = vsub.f32 %v594_v7, %v1073_v5 }
 0x204   : > { %v597_v10 = vsub.f32 %v595_v8, %v1071_v3  ;;  %v612_v3 = vstv %s353_s23 }
 0x205   : > { %v598_v11 = vmul.f32 %v596_v9, %v596_v9 }
 0x206   : > { %v599_v14 = vmul.f32 %v597_v10, %v597_v10 }
 0x207   : > { %v600_v15 = vrot.slane %v598_v11, 4 }
 0x208   : > { %v606_v16 = vrot.slane %v599_v14, 4 }
 0x209   : > { %v601_v13 = vadd.f32 %v600_v15, %v598_v11 }
 0x20a   : > { %v607_v17 = vadd.f32 %v606_v16, %v599_v14 }
 0x20b   : > { %v602_v18 = vrot.slane %v601_v13, 2 }
 0x20c   : > { %v608_v12 = vrot.slane %v607_v17, 2 }
 0x20d   : > { %v603_v22 = vadd.f32 %v602_v18, %v601_v13 }
 0x20e   : > { %v609_v5 = vadd.f32 %v608_v12, %v607_v17 }
 0x20f   : > { %v604_v23 = vrot.slane %v603_v22, 1 }
 0x210   : > { %v610_v24 = vrot.slane %v609_v5, 1 }
 0x211   : > { %v605_v27 = vadd.f32 %v604_v23, %v603_v22 }
 0x212   : > { %v611_v28 = vadd.f32 %v610_v24, %v609_v5 }
 0x213   : > { %v613_v29 = vmul.f32 %v612_v3, %v605_v27 }
 0x214   : > { %v614_v30 = vmul.f32 %v612_v3, %v611_v28 }
 0x216   : > { %v617_v32 = vcombine.low %v613_v29, %v614_v30 }
 0x218   : > { %v624_v33 = vrot.slane %v617_v32, %v623_v31 }
 0x21a   : > { %v631_v34 = vrot.slane %v624_v33, %v623_v31 }
 0x21c   : > { %637 = vst.msk [vmem:[%s317_s26] sm:$0x3] %vm635_vm2, %v631_v34 }
 0x21d   : > { %886 = shalt.err (!%p883_p10)
}
 0x21e   : > { %s887_s20 = scalar_lea.hbm %s1120_s12, 32  ;;  %s891_s24 = scalar_lea.hbm %s1174_s7, 64 }
 0x21f   : > { %p888_p11 = scmp.ne.s32.totalorder %s1120_s12, %s887_s20  ;;  %p892_p1 = scmp.lt.u32.totalorder %s1120_s12, %s1174_s7 }
 0x220   : > { %p893_p2 = scmp.lt.u32.totalorder %s891_s24, %s887_s20  ;;  %p895_p4 = scmp.lt.u32.totalorder %s887_s20, %s1120_s12 }
 0x221   : > { %p889_p12 = pnand %p888_p11, %p1043_p9 }
 0x222   : > { %p894_p3 = por %p893_p2, %p892_p1 }
 0x223   : > { %p890_p0 = pneg %p889_p12 }
 0x224   : > { %p896_p5 = por %p895_p4, %p894_p3 }
 0x226   : > { %p897_p6 = pnand %p896_p5, %p890_p0 }
 0x228   : > { %900 = shalt.err (!%p897_p6)
}
 0x229   : > { %796 = dma.vmem_to_hbm [thread:$0]  (%p1043_p9), %s1122_s27, 32, %s1120_s12, %s639_s14  }
 0x22a PF: > { %p802_p7 = scmp.ge.s32.totalorder %s953_s10, 2  ;;  %s667_s26 = sand.u32 1, %s933_s29  }
 0x22b   : > { %s668_s28 = scalar_lea.sflag [#allocation5], %s667_s26 }
 0x22c   : > { %p799_p8 = pnand %p802_p7, %p1050_p13 }
 0x22e   : > { %928 = dma.done.wait (!%p799_p8), %s668_s28, 32  }
 0x22f   : > { %930 = vsyncadd (!%p799_p8), %s668_s28, 4294967264  ;;  %s26_s10 = sadd.s32 1, %s953_s10   ;;  %s1179_s15 = sld [smem:[#allocation8_spill]] }
 0x230   : > { %p23_p10 = scmp.ge.s32.totalorder %s26_s10, 4   ;;  %s1180_s29 = smov %s937_s30 }
 0x231   : > { %s1181_s30 = smov %s941_s0  ;;  %s1182_s0 = smov %s1056_s18 }
 0x232   : > { %s1183_s8 = smov %s949_s9  ;;  %25 = sbr.rel (!%p23_p10) target bundleno = 19 (0x13), region = 85 }
 0x235   : > { %s1184_s9 = smov %s1179_s15 }
 0x239   :  { %673 = vsyncpa [#allocation5], 1 }
 0x23a   :  { %675 = vsyncpa [#allocation5 + $0x1], 1 }

</bundles_post_ra>
